<compile_context>
chip_gen: v7x
topology: tpu7x:2x2x1
jax: 0.10.0
libtpu: 0.0.40
codegen_flags: <defaults>
</compile_context>

<pallas_src>
import jax
import jax.numpy as jnp
from jax.experimental import pallas as pl
from jax.experimental.pallas import tpu as pltpu


# ---------------------------------------------------------------------------
# Dimensions
# ---------------------------------------------------------------------------
WEATHER_IN = 10     # x[:, 2:-7]  -> 10 columns
POLLUTION_IN = 7    # x[:, -7:]   -> 7 columns
WEATHER_LAT = 8     # weather encoder latent
POLLUTION_LAT = 8   # pollution encoder latent
FEAT = WEATHER_LAT + POLLUTION_LAT + 2      # = 18, matches nn.Linear(18, 16)
IN_F = 2 + WEATHER_IN + POLLUTION_IN        # = 19 total input columns

# Parameter slab layout (single f32 array, transposed weights + bias column).
#   rows [ROW_*:ROW_*+rows), cols [0:fan_in) hold W^T; col BIAS_COL holds b.
BIAS_COL = FEAT                  # = 18
SLAB_COLS = FEAT + 1             # = 19
ROW_WW = 0                       # (8, 10) weather encoder
ROW_WP = 8                       # (8, 7)  pollution encoder
ROW_W1 = 16                      # (16, 18) layer1
ROW_W2 = 32                      # (8, 16)  layer2
ROW_W3 = 40                      # (8, 1)   layer3 weight column, b3 at [40, 18]
SLAB_ROWS = 48

FLOPS_PER_ROW = 2 * (WEATHER_IN * WEATHER_LAT + POLLUTION_IN * POLLUTION_LAT
                     + FEAT * 16 + 16 * 8 + 8 * 1)          # = 1120
BYTES_PER_ROW = (IN_F + 1) * 4                              # x row + output


# ---------------------------------------------------------------------------
# Pallas kernel: full forward pass on one batch tile (transposed layout)
#   xt_ref : (IN_F, TB)       features in sublanes, batch in lanes
#   p_ref  : (48, 19)         packed parameter slab (VMEM-resident)
#   o_ref  : (1, TB)          lane-dense output slab
# ---------------------------------------------------------------------------
def mainmodel_kernel(xt_ref, p_ref, o_ref):
    x_head = xt_ref[0:2, :]                               # x[:, 0:2]^T   (2,  TB)
    x_wth = xt_ref[2:2 + WEATHER_IN, :]                   # x[:, 2:-7]^T  (10, TB)
    x_pol = xt_ref[2 + WEATHER_IN:, :]                    # x[:, -7:]^T   (7,  TB)

    # Static ref-slice views into the packed parameter slab (zero-cost).
    ww = p_ref[ROW_WW:ROW_WW + WEATHER_LAT, 0:WEATHER_IN]           # (8, 10)
    bw = p_ref[ROW_WW:ROW_WW + WEATHER_LAT, BIAS_COL:BIAS_COL + 1]  # (8, 1)
    wp = p_ref[ROW_WP:ROW_WP + POLLUTION_LAT, 0:POLLUTION_IN]       # (8, 7)
    bp = p_ref[ROW_WP:ROW_WP + POLLUTION_LAT, BIAS_COL:BIAS_COL + 1]
    w1 = p_ref[ROW_W1:ROW_W1 + 16, 0:FEAT]                          # (16, 18)
    b1 = p_ref[ROW_W1:ROW_W1 + 16, BIAS_COL:BIAS_COL + 1]
    w2 = p_ref[ROW_W2:ROW_W2 + 8, 0:16]                             # (8, 16)
    b2 = p_ref[ROW_W2:ROW_W2 + 8, BIAS_COL:BIAS_COL + 1]
    w3 = p_ref[ROW_W3:ROW_W3 + 8, 0:1]                              # (8, 1)
    b3 = p_ref[ROW_W3:ROW_W3 + 1, BIAS_COL:BIAS_COL + 1]            # (1, 1)

    # Encoders (Linear + ReLU latent), transposed: h = relu(W^T x^T + b)
    hw = jnp.maximum(
        jnp.dot(ww, x_wth, preferred_element_type=jnp.float32) + bw, 0.0)
    hp = jnp.maximum(
        jnp.dot(wp, x_pol, preferred_element_type=jnp.float32) + bp, 0.0)

    # feature = cat([w1, w2, x[:, 0:2]])^T  -> (18, TB); single K=18 MXU dot.
    feature = jnp.concatenate([hw, hp, x_head], axis=0)
    h1 = jnp.maximum(
        jnp.dot(w1, feature, preferred_element_type=jnp.float32) + b1, 0.0)
    h2 = jnp.maximum(
        jnp.dot(w2, h1, preferred_element_type=jnp.float32) + b2, 0.0)

    # Final 8->1 layer as VPU multiply + XLU sublane reduce (keeps the N=1
    # contraction off the MXU); result is a lane-dense (1, TB) slab.
    out = jnp.sum(h2 * w3, axis=0, keepdims=True) + b3
    o_ref[...] = out.astype(o_ref.dtype)


# ---------------------------------------------------------------------------
# Wrapper: batch grid, pipelined, megacore-parallel
# ---------------------------------------------------------------------------
def mainmodel_forward(x, param_slab, *, block_rows=2048):
    """x: (B, 19) float32, param_slab: (48, 19) float32 -> (B, 1) float32."""
    B = x.shape[0]
    block_rows = max(128, (block_rows // 128) * 128)          # lane-dense tiles
    TB = min(block_rows, max(128, pl.cdiv(B, 128) * 128))
    B_pad = pl.cdiv(B, TB) * TB
    if B_pad != B:
        x = jnp.pad(x, ((0, B_pad - B), (0, 0)))

    # Transpose to feature-major so batch lives in the lane dim inside the
    # kernel (lane-dense stores). Callers holding feature-major data can pass
    # it directly and skip this XLA-side transpose.
    xt = x.T                                                   # (IN_F, B_pad)

    grid = (B_pad // TB,)
    out_t = pl.pallas_call(
        mainmodel_kernel,
        out_shape=jax.ShapeDtypeStruct((1, B_pad), jnp.float32),
        grid=grid,
        in_specs=[
            pl.BlockSpec((IN_F, TB), lambda i: (0, i)),        # streamed batch tile
            pl.BlockSpec((SLAB_ROWS, SLAB_COLS), lambda i: (0, 0)),  # resident params
        ],
        out_specs=pl.BlockSpec((1, TB), lambda i: (0, i)),     # lane-dense output
        compiler_params=pltpu.CompilerParams(
            dimension_semantics=("parallel",)),                # megacore on v7x
        cost_estimate=pl.CostEstimate(
            flops=FLOPS_PER_ROW * B_pad,
            transcendentals=0,
            bytes_accessed=BYTES_PER_ROW * B_pad + SLAB_ROWS * SLAB_COLS * 4),
    )(xt, param_slab)

    return out_t[0, :B][:, None]                               # (B, 1)


# ---------------------------------------------------------------------------
# Deterministic parameter init + host-side packing
# ---------------------------------------------------------------------------
def init_params(key):
    ks = jax.random.split(key, 10)

    def lin(kw, kb, fan_in, fan_out):
        w = jax.random.normal(kw, (fan_in, fan_out), jnp.float32) / jnp.sqrt(
            jnp.float32(fan_in))
        b = jax.random.normal(kb, (1, fan_out), jnp.float32) * 0.01
        return w, b

    ww, bw = lin(ks[0], ks[1], WEATHER_IN, WEATHER_LAT)
    wp, bp = lin(ks[2], ks[3], POLLUTION_IN, POLLUTION_LAT)
    w1, b1 = lin(ks[4], ks[5], FEAT, 16)
    w2, b2 = lin(ks[6], ks[7], 16, 8)
    w3, b3 = lin(ks[8], ks[9], 8, 1)
    return dict(ww=ww, bw=bw, wp=wp, bp=bp, w1=w1, b1=b1,
                w2=w2, b2=b2, w3=w3, b3=b3)


def pack_params(p):
    """Pack all parameters (transposed) into one (48, 19) f32 slab."""
    slab = jnp.zeros((SLAB_ROWS, SLAB_COLS), jnp.float32)
    slab = slab.at[ROW_WW:ROW_WW + WEATHER_LAT, 0:WEATHER_IN].set(p["ww"].T)
    slab = slab.at[ROW_WW:ROW_WW + WEATHER_LAT, BIAS_COL].set(p["bw"][0])
    slab = slab.at[ROW_WP:ROW_WP + POLLUTION_LAT, 0:POLLUTION_IN].set(p["wp"].T)
    slab = slab.at[ROW_WP:ROW_WP + POLLUTION_LAT, BIAS_COL].set(p["bp"][0])
    slab = slab.at[ROW_W1:ROW_W1 + 16, 0:FEAT].set(p["w1"].T)
    slab = slab.at[ROW_W1:ROW_W1 + 16, BIAS_COL].set(p["b1"][0])
    slab = slab.at[ROW_W2:ROW_W2 + 8, 0:16].set(p["w2"].T)
    slab = slab.at[ROW_W2:ROW_W2 + 8, BIAS_COL].set(p["b2"][0])
    slab = slab.at[ROW_W3:ROW_W3 + 8, 0].set(p["w3"][:, 0])
    slab = slab.at[ROW_W3, BIAS_COL].set(p["b3"][0, 0])
    return slab


# ---------------------------------------------------------------------------
# Pure-JAX reference (mirrors the PyTorch forward with the stand-in encoders)
# ---------------------------------------------------------------------------
def reference_forward(x, p):
    xh = x[:, 0:2]
    xw = x[:, 2:2 + WEATHER_IN]
    xp = x[:, 2 + WEATHER_IN:]
    w1 = jnp.maximum(xw @ p["ww"] + p["bw"], 0.0)
    w2 = jnp.maximum(xp @ p["wp"] + p["bp"], 0.0)
    feature = jnp.concatenate([w1, w2, xh], axis=1)
    h1 = jnp.maximum(feature @ p["w1"] + p["b1"], 0.0)
    h2 = jnp.maximum(h1 @ p["w2"] + p["b2"], 0.0)
    return h2 @ p["w3"] + p["b3"]


if __name__ == "__main__":
    key = jax.random.PRNGKey(0)
    k_x, k_p = jax.random.split(key)

    B = 8
    x = jax.random.normal(k_x, (B, IN_F), jnp.float32)
    params = init_params(k_p)
    slab = pack_params(params)

    out = mainmodel_forward(x, slab)
    out = jax.block_until_ready(out)

    ref = reference_forward(x, params)
    assert out.shape == (B, 1)
    assert jnp.allclose(out, ref, atol=1e-5, rtol=1e-5), "mismatch vs reference"

    print("KERNEL_OK")
</pallas_src>

<mosaic_0001>
module attributes {stable_mosaic.version = 11 : i64} {
  func.func @mainmodel_kernel(%arg0: i32, %arg1: memref<19x128xf32, #tpu.memory_space<vmem>>, %arg2: memref<48x19xf32, #tpu.memory_space<vmem>>, %arg3: memref<1x128xf32, #tpu.memory_space<vmem>>) attributes {dimension_semantics = [#tpu.dimension_semantics<parallel>], iteration_bounds = array<i64: 1>, scalar_prefetch = 0 : i64, scratch_operands = 0 : i64, tpu.core_type = #tpu.core_type<tc>, window_params = [{transform_indices = @transform_0, window_bounds = array<i64: 19, 128>}, {pipeline_mode = #tpu.pipeline_mode<synchronous>, transform_indices = @transform_1, window_bounds = array<i64: 48, 19>}, {transform_indices = @transform_2, window_bounds = array<i64: 1, 128>}]} {
    %c0 = arith.constant 0 : index
    %c0_0 = arith.constant 0 : index
    %0 = vector.load %arg1[%c0, %c0_0] : memref<19x128xf32, #tpu.memory_space<vmem>>, vector<2x128xf32>
    %c2 = arith.constant 2 : index
    %c0_1 = arith.constant 0 : index
    %1 = vector.load %arg1[%c2, %c0_1] : memref<19x128xf32, #tpu.memory_space<vmem>>, vector<10x128xf32>
    %c12 = arith.constant 12 : index
    %c0_2 = arith.constant 0 : index
    %2 = vector.load %arg1[%c12, %c0_2] : memref<19x128xf32, #tpu.memory_space<vmem>>, vector<7x128xf32>
    %c0_3 = arith.constant 0 : index
    %c0_4 = arith.constant 0 : index
    %3 = vector.load %arg2[%c0_3, %c0_4] : memref<48x19xf32, #tpu.memory_space<vmem>>, vector<8x10xf32>
    %c0_5 = arith.constant 0 : index
    %c18 = arith.constant 18 : index
    %4 = vector.load %arg2[%c0_5, %c18] : memref<48x19xf32, #tpu.memory_space<vmem>>, vector<8x1xf32>
    %c8 = arith.constant 8 : index
    %c0_6 = arith.constant 0 : index
    %5 = vector.load %arg2[%c8, %c0_6] : memref<48x19xf32, #tpu.memory_space<vmem>>, vector<8x7xf32>
    %c8_7 = arith.constant 8 : index
    %c18_8 = arith.constant 18 : index
    %6 = vector.load %arg2[%c8_7, %c18_8] : memref<48x19xf32, #tpu.memory_space<vmem>>, vector<8x1xf32>
    %c16 = arith.constant 16 : index
    %c0_9 = arith.constant 0 : index
    %7 = vector.load %arg2[%c16, %c0_9] : memref<48x19xf32, #tpu.memory_space<vmem>>, vector<16x18xf32>
    %c16_10 = arith.constant 16 : index
    %c18_11 = arith.constant 18 : index
    %8 = vector.load %arg2[%c16_10, %c18_11] : memref<48x19xf32, #tpu.memory_space<vmem>>, vector<16x1xf32>
    %c32 = arith.constant 32 : index
    %c0_12 = arith.constant 0 : index
    %9 = vector.load %arg2[%c32, %c0_12] : memref<48x19xf32, #tpu.memory_space<vmem>>, vector<8x16xf32>
    %c32_13 = arith.constant 32 : index
    %c18_14 = arith.constant 18 : index
    %10 = vector.load %arg2[%c32_13, %c18_14] : memref<48x19xf32, #tpu.memory_space<vmem>>, vector<8x1xf32>
    %c40 = arith.constant 40 : index
    %c0_15 = arith.constant 0 : index
    %11 = vector.load %arg2[%c40, %c0_15] : memref<48x19xf32, #tpu.memory_space<vmem>>, vector<8x1xf32>
    %c40_16 = arith.constant 40 : index
    %c18_17 = arith.constant 18 : index
    %12 = vector.load %arg2[%c40_16, %c18_17] : memref<48x19xf32, #tpu.memory_space<vmem>>, vector<1x1xf32>
    %cst = arith.constant dense<0.000000e+00> : vector<8x128xf32>
    %13 = tpu.matmul %3, %1, %cst {dimension_numbers = #tpu.dot_dimension_numbers<[1], [0], [0], [1], [0, 0, 1, 1], [], []>} : vector<8x10xf32>, vector<10x128xf32>, vector<8x128xf32> -> vector<8x128xf32>
    %14 = vector.broadcast %4 : vector<8x1xf32> to vector<8x128xf32>
    %15 = arith.addf %13, %14 : vector<8x128xf32>
    %cst_18 = arith.constant 0.000000e+00 : f32
    %16 = vector.broadcast %cst_18 : f32 to vector<8x128xf32>
    %17 = arith.maximumf %15, %16 : vector<8x128xf32>
    %cst_19 = arith.constant dense<0.000000e+00> : vector<8x128xf32>
    %18 = tpu.matmul %5, %2, %cst_19 {dimension_numbers = #tpu.dot_dimension_numbers<[1], [0], [0], [1], [0, 0, 1, 1], [], []>} : vector<8x7xf32>, vector<7x128xf32>, vector<8x128xf32> -> vector<8x128xf32>
    %19 = vector.broadcast %6 : vector<8x1xf32> to vector<8x128xf32>
    %20 = arith.addf %18, %19 : vector<8x128xf32>
    %cst_20 = arith.constant 0.000000e+00 : f32
    %21 = vector.broadcast %cst_20 : f32 to vector<8x128xf32>
    %22 = arith.maximumf %20, %21 : vector<8x128xf32>
    %23 = tpu.concatenate %17, %22, %0 in 0 : vector<8x128xf32>, vector<8x128xf32>, vector<2x128xf32> -> vector<18x128xf32>
    %cst_21 = arith.constant dense<0.000000e+00> : vector<16x128xf32>
    %24 = tpu.matmul %7, %23, %cst_21 {dimension_numbers = #tpu.dot_dimension_numbers<[1], [0], [0], [1], [0, 0, 1, 1], [], []>} : vector<16x18xf32>, vector<18x128xf32>, vector<16x128xf32> -> vector<16x128xf32>
    %25 = vector.broadcast %8 : vector<16x1xf32> to vector<16x128xf32>
    %26 = arith.addf %24, %25 : vector<16x128xf32>
    %cst_22 = arith.constant 0.000000e+00 : f32
    %27 = vector.broadcast %cst_22 : f32 to vector<16x128xf32>
    %28 = arith.maximumf %26, %27 : vector<16x128xf32>
    %cst_23 = arith.constant dense<0.000000e+00> : vector<8x128xf32>
    %29 = tpu.matmul %9, %28, %cst_23 {dimension_numbers = #tpu.dot_dimension_numbers<[1], [0], [0], [1], [0, 0, 1, 1], [], []>} : vector<8x16xf32>, vector<16x128xf32>, vector<8x128xf32> -> vector<8x128xf32>
    %30 = vector.broadcast %10 : vector<8x1xf32> to vector<8x128xf32>
    %31 = arith.addf %29, %30 : vector<8x128xf32>
    %cst_24 = arith.constant 0.000000e+00 : f32
    %32 = vector.broadcast %cst_24 : f32 to vector<8x128xf32>
    %33 = arith.maximumf %31, %32 : vector<8x128xf32>
    %34 = vector.broadcast %11 : vector<8x1xf32> to vector<8x128xf32>
    %35 = arith.mulf %33, %34 : vector<8x128xf32>
    %cst_25 = arith.constant dense<0.000000e+00> : vector<128xf32>
    %36 = vector.multi_reduction <add>, %35, %cst_25 [0] : vector<8x128xf32> to vector<128xf32>
    %37 = vector.shape_cast %36 : vector<128xf32> to vector<1x128xf32>
    %38 = vector.broadcast %12 : vector<1x1xf32> to vector<1x128xf32>
    %39 = arith.addf %37, %38 : vector<1x128xf32>
    %c0_26 = arith.constant 0 : index
    %c0_27 = arith.constant 0 : index
    %40 = vector.load %arg3[%c0_26, %c0_27] : memref<1x128xf32, #tpu.memory_space<vmem>>, vector<1x128xf32>
    tpu.vector_store %arg3[%c0_26, %c0_27], %39 {strides = array<i32>} : memref<1x128xf32, #tpu.memory_space<vmem>>, vector<1x128xf32>,
    return
  }
  func.func @transform_0(%arg0: i32) -> (i32, i32) {
    %c0_i32 = arith.constant 0 : i32
    %c0_i32_0 = arith.constant 0 : i32
    return %c0_i32, %arg0 : i32, i32
  }
  func.func @transform_1(%arg0: i32) -> (i32, i32) {
    %c0_i32 = arith.constant 0 : i32
    %c0_i32_0 = arith.constant 0 : i32
    %c0_i32_1 = arith.constant 0 : i32
    return %c0_i32, %c0_i32_0 : i32, i32
  }
  func.func @transform_2(%arg0: i32) -> (i32, i32) {
    %c0_i32 = arith.constant 0 : i32
    %c0_i32_0 = arith.constant 0 : i32
    return %c0_i32, %arg0 : i32, i32
  }
}

</mosaic_0001>

<bundles_post_ra>
// kernel: tpu_custom_call.1
= control target key start
LH: loop header
LB: loop body
LE: loop exit
PB: predicated region body
PF: predicated region fallthrough
CT: control target
= control target key end

     0   :  { %vm114_vm0 = vcmask 1046528   ;;  %v490_v1 = vmov 0.0   ;;  %v491_v2 = vmov 0.0|0.0   ;;  %vm31_vm1 = vcmask 1041408   ;;  %s565_s0 = inlined_call_operand.vmem [shape: f32[19,128], index: 0, kind: input, shape index: {}]   ;;  %s566_s1 = inlined_call_operand.vmem [shape: f32[48,19], index: 1, kind: input, shape index: {}]   ;;  %s567_s2 = inlined_call_operand.hbm [shape: f32[1,128], index: 2, kind: output, shape index: {}]  }
   0x1   :  { %v15_v0 = vld [vmem:[%s565_s0 + $0xc] sm:$0x7f]  ;;  %424 = vmatprep.subr.mxu1 %v490_v1  ;;  %445 = vmatprep.subr.bf16.mxu0 %v491_v2  ;;  %v13_v3 = vld [vmem:[%s565_s0 + $0x2] sm:$0xff]  ;;  %v14_v4 = vld [vmem:[%s565_s0 + $0xa] sm:$0x3]  ;;  %vm492_vm2 = vmmov 0  }
   0x2   :  { %v17_v5 = vld [vmem:[%s566_s1 + $0x8] sm:$0xff]  ;;  %425 = vmatpush3.msk.msra.mxu1 %vm114_vm0, %v15_v0  ;;  %426 = vmatprep.mubr.msk.f32.mxu1 %vm492_vm2, %v490_v1  ;;  %v446_v6 = vpack.c.bf16 %v14_v4, %v13_v3  ;;  %vm493_vm3 = vmmov 1   ;;  %vm111_vm5 = vcmask 56320  }
   0x3   :  { %vm447_vm4 = vmpackc.low %vm31_vm1, %vm493_vm3  ;;  %427 = vmatmul.mubr.msk.f32.vlgmr.msra.gmra.mrb[0].mxu1 %vm111_vm5, %v17_v5  ;;  %421 = vmatprep.mubr.msk.f32.mxu0 %vm492_vm2, %v490_v1 }
   0x4   :  { %7 = vsyncpa [#allocation3], 0  ;;  %448 = vmatpush3.bf16.msk.msra.mxu0 %vm447_vm4, %v446_v6  ;;  %v16_v7 = vld [vmem:[%s566_s1] sm:$0xff]  ;;  %vm28_vm6 = vcmask 80896   ;;  %v494_v8 = vmov 18   ;;  %v18_v11 = vld [vmem:[%s566_s1 + $0x10] sm:$0xff] }
   0x5   :  { %463 = vset.pattern.permute.xlu0 %v494_v8  ;;  %464 = vset.pattern.permute.xlu1 %v494_v8  ;;  %v20_v9 = vld [vmem:[%s566_s1 + $0x20] sm:$0xff]  ;;  %v22_v10 = vld [vmem:[%s566_s1 + $0x28] sm:$0x1]  ;;  %vm199_vm7 = vcmask 146432   ;;  %v19_v12 = vld [vmem:[%s566_s1 + $0x18] sm:$0xff]  ;;  %v495_v26 = vmov 0  }
   0x6   :  { %25 = vperm.xlu0 %463, %v16_v7   ;;  %453 = vmatprep.subr.bf16.mxu0 %v491_v2  ;;  %v12_v24 = vld [vmem:[%s565_s0] sm:$0x3]  ;;  %v21_v25 = vld [vmem:[%s566_s1 + $0x28] sm:$0xff]  ;;  %vm289_vm8 = vcmask 130048   ;;  %s496_s0 = smov [#allocation2]  }
   0x7   :  { %422 = vmatmul.mubr.msk.f32.vlgmr.msra.gmra.mrb[0].mxu0 %vm28_vm6, %v16_v7  ;;  %435 = vmatprep.mubr.msk.f32.mxu1 %vm199_vm7, %v18_v11  ;;  %s388_s1 = sshll.u32 %s496_s0, 4  ;;  %s389_s1 = int_to_ptr.vmem [resolvable:$true] %s388_s1 }
   0x8   :  { %442 = vmatprep.mubr.msk.f32.mxu0 %vm492_vm2, %v490_v1  ;;  %191 = vperm.xlu1 %464, %v18_v11   ;;  %s466_s3 = scalar_lea.vmem %s389_s1, 16  ;;  %s470_s4 = scalar_lea.vmem %s389_s1, 32 }
   0x9   :  { %p467_p0 = scmp.ne.s32.totalorder %s389_s1, %s466_s3  ;;  %p471_p1 = scmp.lt.s32.totalorder %s389_s1, %s389_s1 }
   0xa   :  { %108 = vperm.xlu0 %463, %v17_v5   ;;  %p472_p2 = scmp.lt.s32.totalorder %s470_s4, %s466_s3 }
   0xc   :  { %196 = vperm.xlu1 %464, %v19_v12   ;;  %p473_p3 = por %p472_p2, %p471_p1 }
   0xe   :  { %286 = vperm.xlu0 %463, %v20_v9   ;;  %p474_p4 = pnand %p473_p3, %p467_p0 }
  0x10   :  { %465 = vset.pattern.permute.xlu1 %v495_v26 }
  0x11   :  { %365 = vperm.xlu1 %465, %v21_v25  }
  0x12   :  { %377 = vperm.xlu0 %463, %v22_v10  }
  0x85   :  { %v26_v13 = vpop.permute.xlu0 %25 }
  0x87   :  { %v192_v27 = vpop.permute.xlu1 %191 }
  0x89   :  { %v109_v16 = vpop.permute.xlu0 %108 }
  0x8b   :  { %v197_v28 = vpop.permute.xlu1 %196 }
  0x8d   :  { %v287_v36 = vpop.permute.xlu0 %286 }
  0x90   :  { %v366_v40 = vpop.permute.xlu1 %365 }
  0x91   :  { %v378_v49 = vpop.permute.xlu0 %377 }
  0xd6   :  { %v184_v14 = vpop.f32.mrb[0].mxu1 }
  0xd7   :  { %v428_v15 = vpop.f32.mrb[1].mxu1  ;;  %v185_v17 = vadd.f32 %v184_v14, %v109_v16 }
  0xd9   :  { %v188_v21 = vmax.f32 %v185_v17, 0.0 }
  0xda   :  { %v101_v18 = vpop.f32.mrb[0].mxu0 }
  0xdb   :  { %v102_v19 = vadd.f32 %v101_v18, %v26_v13  ;;  %v423_v20 = vpop.f32.mrb[1].mxu0 }
  0xdd   :  { %v105_v22 = vmax.f32 %v102_v19, 0.0 }
  0xdf   :  { %v449_v23 = vpack.c.bf16 %v188_v21, %v105_v22 }
  0xe1   :  { %450 = vmatprep.subr.bf16.mxu1 %v449_v23 }
  0xe2   :  { %452 = vmatpush3.bf16.msra.mxu1 %v449_v23 }
  0xe3   :  { %433 = vmatprep.subr.msk.mxu1 %vm31_vm1, %v12_v24 }
  0xe6   :  { %434 = vmatpush3.msk.msra.mxu1 %vm31_vm1, %v12_v24 }
  0xe7   :  { %436 = vmatmul.mubr.msk.f32.vlgmr.msra.gmra.mrb[2].mxu1 %vm199_vm7, %v19_v12 }
 0x1ba   :  { %v437_v29 = vpop.f32.mrb[2].mxu1 }
 0x1bb   :  { %v279_v30 = vadd.f32 %v437_v29, %v197_v28  ;;  %v273_v31 = vpop.f32.mrb[3].mxu1 }
 0x1bc   :  { %v274_v32 = vadd.f32 %v273_v31, %v192_v27 }
 0x1bd   :  { %v283_v33 = vmax.f32 %v279_v30, 0.0 }
 0x1be   :  { %v282_v34 = vmax.f32 %v274_v32, 0.0 }
 0x1c0   :  { %v454_v35 = vpack.c.bf16 %v283_v33, %v282_v34 }
 0x1c2   :  { %455 = vmatpush3.bf16.msra.mxu0 %v454_v35 }
 0x1c5   :  { %443 = vmatmul.mubr.msk.f32.vlgmr.msra.gmra.mrb[2].mxu0 %vm289_vm8, %v20_v9 }
 0x298   :  { %v358_v37 = vpop.f32.mrb[2].mxu0 }
 0x299   :  { %v359_v38 = vadd.f32 %v358_v37, %v287_v36  ;;  %v444_v39 = vpop.f32.mrb[3].mxu0 }
 0x29b   :  { %v362_v41 = vmax.f32 %v359_v38, 0.0 }
 0x29d   :  { %v368_v42 = vmul.f32 %v366_v40, %v362_v41 }
 0x29f   :  { %v369_v43 = vrot.slane %v368_v42, 4 }
 0x2a1   :  { %v370_v44 = vadd.f32 %v369_v43, %v368_v42 }
 0x2a3   :  { %v371_v45 = vrot.slane %v370_v44, 2 }
 0x2a5   :  { %v372_v46 = vadd.f32 %v371_v45, %v370_v44 }
 0x2a7   :  { %v373_v47 = vrot.slane %v372_v46, 1 }
 0x2a9   :  { %v374_v48 = vadd.f32 %v373_v47, %v372_v46 }
 0x2ab   :  { %v380_v50 = vadd.f32 %v378_v49, %v374_v48 }
 0x2ad   :  { %381 = vst [vmem:[#allocation2] sm:$0x1] %v380_v50 }
 0x2ae   :  { %477 = shalt.err (!%p474_p4)
}
 0x2af   :  { %s478_s7 = scalar_lea.hbm %s567_s2, 16 }
 0x2b0   :  { %p479_p5 = scmp.ne.s32.totalorder %s567_s2, %s478_s7  ;;  %p482_p6 = scmp.lt.u32.totalorder %s478_s7, %s567_s2 }
 0x2b2   :  { %p484_p7 = pnand %p482_p6, %p479_p5 }
 0x2b4   :  { %487 = shalt.err (!%p484_p7)
}
 0x2b5   :  { %391 = dma.vmem_to_hbm [thread:$0]  %s389_s1, 16, %s567_s2, [#allocation3]  }
 0x2b6   :  { %488 = dma.done.wait [#allocation3], 16  }
 0x2b7   :  { %489 = vsyncadd [#allocation3], 4294967280 }
 0x2b8   :  { %395 = vsyncpa [#allocation3], 1 }

</bundles_post_ra>
